<compile_context>
chip_gen: v7x
topology: tpu7x:2x2x1
jax: 0.10.0
libtpu: 0.0.40
codegen_flags: <defaults>
</compile_context>

<pallas_src>
import numpy as np
import jax
import jax.numpy as jnp
from jax.experimental import pallas as pl
from jax.experimental.pallas import tpu as pltpu


# --------------------------------------------------------------------------
# Kernel
# --------------------------------------------------------------------------
def _make_prober_kernel(num_layers):
    """Fused MLP kernel: refs = (x, w0, b0, w1, b1, ..., out)."""

    def kernel(*refs):
        x_ref = refs[0]
        out_ref = refs[-1]
        params = refs[1:-1]

        h = x_ref[...].astype(jnp.float32)
        for i in range(num_layers):
            w = params[2 * i][...]
            b = params[2 * i + 1][...]          # shape (1, f_out), broadcasts over rows
            h = jnp.dot(h, w, preferred_element_type=jnp.float32) + b
            if i < num_layers - 1:
                h = jnp.maximum(h, 0.0)          # ReLU between hidden layers
        out_ref[...] = h.astype(out_ref.dtype)

    return kernel


# --------------------------------------------------------------------------
# Wrapper
# --------------------------------------------------------------------------
def prober_forward(e, weights, biases, *, tile_rows=512):
    """Pallas equivalent of Prober.forward.

    Args:
        e:        [..., embedding] float32
        weights:  list of [f_in, f_out]  (note: already transposed vs torch's [out, in])
        biases:   list of [f_out]
    Returns:
        [..., output_dim] float32   (output_dim = prod(output_shape))
    """
    num_layers = len(weights)
    assert len(biases) == num_layers and num_layers >= 1

    *lead, emb = e.shape
    n = int(np.prod(lead)) if lead else 1
    out_dim = int(weights[-1].shape[1])

    x = e.reshape(n, emb).astype(jnp.float32)
    b2d = [b.reshape(1, -1).astype(jnp.float32) for b in biases]
    flat_params = []
    for w, b in zip(weights, b2d):
        flat_params += [w.astype(jnp.float32), b]

    kernel = _make_prober_kernel(num_layers)

    if n <= tile_rows:
        # Small case (demo shapes): single block, whole arrays in VMEM, no grid.
        out = pl.pallas_call(
            kernel,
            out_shape=jax.ShapeDtypeStruct((n, out_dim), jnp.float32),
        )(x, *flat_params)
    else:
        # Large case: row-tiled 1-D grid, weights resident across steps.
        n_pad = tile_rows * pl.cdiv(n, tile_rows)
        if n_pad != n:
            x = jnp.pad(x, ((0, n_pad - n), (0, 0)))
        grid = (n_pad // tile_rows,)

        in_specs = [pl.BlockSpec((tile_rows, emb), lambda i: (i, 0))]
        for w, b in zip(weights, b2d):
            in_specs.append(pl.BlockSpec(w.shape, lambda i: (0, 0)))
            in_specs.append(pl.BlockSpec(b.shape, lambda i: (0, 0)))
        out_specs = pl.BlockSpec((tile_rows, out_dim), lambda i: (i, 0))

        out = pl.pallas_call(
            kernel,
            out_shape=jax.ShapeDtypeStruct((n_pad, out_dim), jnp.float32),
            grid=grid,
            in_specs=in_specs,
            out_specs=out_specs,
            compiler_params=pltpu.CompilerParams(
                dimension_semantics=("parallel",)),
        )(x, *flat_params)
        out = out[:n]

    return out.reshape(*lead, out_dim)


# --------------------------------------------------------------------------
# Parameter construction mirroring Prober.__init__
# --------------------------------------------------------------------------
def init_prober_params(key, embedding, arch, output_shape):
    output_dim = int(np.prod(output_shape))
    arch_list = list(map(int, arch.split('-'))) if arch != '' else []
    f = [embedding] + arch_list + [output_dim]
    weights, biases = [], []
    for i in range(len(f) - 1):
        key, kw, kb = jax.random.split(key, 3)
        bound = 1.0 / np.sqrt(f[i])          # PyTorch nn.Linear default init range
        weights.append(jax.random.uniform(kw, (f[i], f[i + 1]),
                                          jnp.float32, -bound, bound))
        biases.append(jax.random.uniform(kb, (f[i + 1],),
                                         jnp.float32, -bound, bound))
    return weights, biases


def prober_reference(e, weights, biases):
    """Pure-JAX reference (for correctness check)."""
    h = e.astype(jnp.float32)
    for i, (w, b) in enumerate(zip(weights, biases)):
        h = h @ w + b
        if i < len(weights) - 1:
            h = jnp.maximum(h, 0.0)
    return h


# --------------------------------------------------------------------------
# Demo / self-test
# --------------------------------------------------------------------------
if __name__ == "__main__":
    embedding = 32
    arch = "64-32"                # -> layers 32->64 (ReLU) ->32 (ReLU) ->4
    output_shape = [2, 2]         # output_dim = 4 (forward returns flat dim)
    B, T = 2, 8

    key = jax.random.PRNGKey(0)
    key, ke = jax.random.split(key)
    e = jax.random.normal(ke, (B, T, embedding), dtype=jnp.float32)
    weights, biases = init_prober_params(key, embedding, arch, output_shape)

    out = prober_forward(e, weights, biases)
    out = jax.block_until_ready(out)

    ref = prober_reference(e, weights, biases)

    assert out.shape == (B, T, int(np.prod(output_shape))), out.shape
    assert out.dtype == jnp.float32, out.dtype
    assert bool(jnp.all(jnp.isfinite(out)))
    np.testing.assert_allclose(np.asarray(out), np.asarray(ref),
                               rtol=2e-2, atol=2e-2)

    print("KERNEL_OK")
</pallas_src>

<mosaic_0001>
module attributes {stable_mosaic.version = 11 : i64} {
  func.func @kernel(%arg0: memref<16x32xf32, #tpu.memory_space<vmem>>, %arg1: memref<32x64xf32, #tpu.memory_space<vmem>>, %arg2: memref<1x64xf32, #tpu.memory_space<vmem>>, %arg3: memref<64x32xf32, #tpu.memory_space<vmem>>, %arg4: memref<1x32xf32, #tpu.memory_space<vmem>>, %arg5: memref<32x4xf32, #tpu.memory_space<vmem>>, %arg6: memref<1x4xf32, #tpu.memory_space<vmem>>, %arg7: memref<16x4xf32, #tpu.memory_space<vmem>>) attributes {dimension_semantics = [], scalar_prefetch = 0 : i64, scratch_operands = 0 : i64, tpu.core_type = #tpu.core_type<tc>} {
    %c0 = arith.constant 0 : index
    %c0_0 = arith.constant 0 : index
    %0 = vector.load %arg0[%c0, %c0_0] : memref<16x32xf32, #tpu.memory_space<vmem>>, vector<16x32xf32>
    %c0_1 = arith.constant 0 : index
    %c0_2 = arith.constant 0 : index
    %1 = vector.load %arg1[%c0_1, %c0_2] : memref<32x64xf32, #tpu.memory_space<vmem>>, vector<32x64xf32>
    %c0_3 = arith.constant 0 : index
    %c0_4 = arith.constant 0 : index
    %2 = vector.load %arg2[%c0_3, %c0_4] : memref<1x64xf32, #tpu.memory_space<vmem>>, vector<1x64xf32>
    %cst = arith.constant dense<0.000000e+00> : vector<16x64xf32>
    %3 = tpu.matmul %0, %1, %cst {dimension_numbers = #tpu.dot_dimension_numbers<[1], [0], [0], [1], [0, 0, 1, 1], [], []>} : vector<16x32xf32>, vector<32x64xf32>, vector<16x64xf32> -> vector<16x64xf32>
    %4 = vector.broadcast %2 : vector<1x64xf32> to vector<16x64xf32>
    %5 = arith.addf %3, %4 : vector<16x64xf32>
    %cst_5 = arith.constant 0.000000e+00 : f32
    %6 = vector.broadcast %cst_5 : f32 to vector<16x64xf32>
    %7 = arith.maximumf %5, %6 : vector<16x64xf32>
    %c0_6 = arith.constant 0 : index
    %c0_7 = arith.constant 0 : index
    %8 = vector.load %arg3[%c0_6, %c0_7] : memref<64x32xf32, #tpu.memory_space<vmem>>, vector<64x32xf32>
    %c0_8 = arith.constant 0 : index
    %c0_9 = arith.constant 0 : index
    %9 = vector.load %arg4[%c0_8, %c0_9] : memref<1x32xf32, #tpu.memory_space<vmem>>, vector<1x32xf32>
    %cst_10 = arith.constant dense<0.000000e+00> : vector<16x32xf32>
    %10 = tpu.matmul %7, %8, %cst_10 {dimension_numbers = #tpu.dot_dimension_numbers<[1], [0], [0], [1], [0, 0, 1, 1], [], []>} : vector<16x64xf32>, vector<64x32xf32>, vector<16x32xf32> -> vector<16x32xf32>
    %11 = vector.broadcast %9 : vector<1x32xf32> to vector<16x32xf32>
    %12 = arith.addf %10, %11 : vector<16x32xf32>
    %cst_11 = arith.constant 0.000000e+00 : f32
    %13 = vector.broadcast %cst_11 : f32 to vector<16x32xf32>
    %14 = arith.maximumf %12, %13 : vector<16x32xf32>
    %c0_12 = arith.constant 0 : index
    %c0_13 = arith.constant 0 : index
    %15 = vector.load %arg5[%c0_12, %c0_13] : memref<32x4xf32, #tpu.memory_space<vmem>>, vector<32x4xf32>
    %c0_14 = arith.constant 0 : index
    %c0_15 = arith.constant 0 : index
    %16 = vector.load %arg6[%c0_14, %c0_15] : memref<1x4xf32, #tpu.memory_space<vmem>>, vector<1x4xf32>
    %cst_16 = arith.constant dense<0.000000e+00> : vector<16x4xf32>
    %17 = tpu.matmul %14, %15, %cst_16 {dimension_numbers = #tpu.dot_dimension_numbers<[1], [0], [0], [1], [0, 0, 1, 1], [], []>} : vector<16x32xf32>, vector<32x4xf32>, vector<16x4xf32> -> vector<16x4xf32>
    %18 = vector.broadcast %16 : vector<1x4xf32> to vector<16x4xf32>
    %19 = arith.addf %17, %18 : vector<16x4xf32>
    %c0_17 = arith.constant 0 : index
    %c0_18 = arith.constant 0 : index
    %20 = vector.load %arg7[%c0_17, %c0_18] : memref<16x4xf32, #tpu.memory_space<vmem>>, vector<16x4xf32>
    tpu.vector_store %arg7[%c0_17, %c0_18], %19 {strides = array<i32>} : memref<16x4xf32, #tpu.memory_space<vmem>>, vector<16x4xf32>,
    return
  }
}

</mosaic_0001>

<bundles_post_ra>
// kernel: tpu_custom_call.1
= control target key start
LH: loop header
LB: loop body
LE: loop exit
PB: predicated region body
PF: predicated region fallthrough
CT: control target
= control target key end

     0   :  { %vm39_vm0 = vcmask 261120   ;;  %vm138_vm1 = vcmask 523264   ;;  %vm314_vm2 = vcmask 31744   ;;  %s538_s1 = inlined_call_operand.vmem [shape: f32[32,64], index: 1, kind: input, shape index: {}]   ;;  %s539_s0 = inlined_call_operand.vmem [shape: f32[16,32], index: 0, kind: input, shape index: {}]   ;;  %s540_s3 = inlined_call_operand.vmem [shape: f32[64,32], index: 3, kind: input, shape index: {}]   ;;  %s541_s5 = inlined_call_operand.vmem [shape: f32[32,4], index: 5, kind: input, shape index: {}]   ;;  %s542_s2 = inlined_call_operand.vmem [shape: f32[1,64], index: 2, kind: input, shape index: {}]   ;;  %s543_s4 = inlined_call_operand.vmem [shape: f32[1,32], index: 4, kind: input, shape index: {}]   ;;  %s544_s6 = inlined_call_operand.vmem [shape: f32[1,4], index: 6, kind: input, shape index: {}]   ;;  %s545_s7 = inlined_call_operand.vmem [shape: f32[16,4], index: 7, kind: output, shape index: {}]  }
   0x1   :  { %v28_v0 = vld [vmem:[%s538_s1] sm:$0xff]  ;;  %v29_v1 = vld [vmem:[%s538_s1 + $0x8] sm:$0xff]  ;;  %v30_v2 = vld [vmem:[%s538_s1 + $0x10] sm:$0xff] }
   0x2   :  { %v393_v3 = vpack.c.bf16 %v29_v1, %v28_v0  ;;  %v31_v4 = vld [vmem:[%s538_s1 + $0x18] sm:$0xff]  ;;  %v26_v5 = vld [vmem:[%s539_s0] sm:$0xff]  ;;  %v124_v8 = vld [vmem:[%s540_s3 + $0x8] sm:$0xff] }
   0x3   :  { %v397_v6 = vpack.c.bf16 %v31_v4, %v30_v2  ;;  %360 = vmatprep.mubr.msk.f32.mxu0 %vm39_vm0, %v26_v5  ;;  %v123_v7 = vld [vmem:[%s540_s3] sm:$0xff]  ;;  %v125_v9 = vld [vmem:[%s540_s3 + $0x10] sm:$0xff]  ;;  %v126_v11 = vld [vmem:[%s540_s3 + $0x18] sm:$0xff] }
   0x4   :  { %394 = vmatprep.subr.bf16.mxu0 %v393_v3  ;;  %v401_v10 = vpack.c.bf16 %v124_v8, %v123_v7  ;;  %v405_v12 = vpack.c.bf16 %v126_v11, %v125_v9  ;;  %v127_v13 = vld [vmem:[%s540_s3 + $0x20] sm:$0xff]  ;;  %v128_v14 = vld [vmem:[%s540_s3 + $0x28] sm:$0xff]  ;;  %v129_v17 = vld [vmem:[%s540_s3 + $0x30] sm:$0xff] }
   0x5   :  { %396 = vmatpush3.bf16.msra.mxu0 %v393_v3  ;;  %v409_v15 = vpack.c.bf16 %v128_v14, %v127_v13  ;;  %v27_v16 = vld [vmem:[%s539_s0 + $0x8] sm:$0xff]  ;;  %v130_v18 = vld [vmem:[%s540_s3 + $0x38] sm:$0xff]  ;;  %v222_v20 = vld [vmem:[%s541_s5] sm:$0xff] }
   0x6   :  { %398 = vmatprep.subr.bf16.mxu0 %v397_v6  ;;  %402 = vmatprep.subr.bf16.mxu1 %v401_v10  ;;  %v413_v19 = vpack.c.bf16 %v130_v18, %v129_v17  ;;  %v223_v21 = vld [vmem:[%s541_s5 + $0x8] sm:$0xff]  ;;  %v321_v23 = vld [vmem:[%s542_s2] ss:$0 sm:$0xff]  ;;  %v224_v30 = vld [vmem:[%s541_s5 + $0x10] sm:$0xff] }
   0x7   :  { %404 = vmatpush3.bf16.msra.mxu1 %v401_v10  ;;  %v417_v22 = vpack.c.bf16 %v223_v21, %v222_v20  ;;  %v225_v31 = vld [vmem:[%s541_s5 + $0x18] sm:$0xff]  ;;  %v324_v33 = vld [vmem:[%s543_s4] ss:$0 sm:$0xff] }
   0x8   :  { %406 = vmatprep.subr.bf16.mxu1 %v405_v12  ;;  %v421_v32 = vpack.c.bf16 %v225_v31, %v224_v30  ;;  %v327_v40 = vld [vmem:[%s544_s6] ss:$0 sm:$0xff] }
   0x9   :  { %400 = vmatpush3.bf16.msra.mxu0 %v397_v6 }
   0xa   :  { %418 = vmatprep.subr.bf16.mxu0 %v417_v22 }
   0xb   :  { %408 = vmatpush3.bf16.msra.mxu1 %v405_v12 }
   0xc   :  { %361 = vmatmul.mubr.msk.f32.vlgmr.msra.gmra.mrb[0].mxu0 %vm39_vm0, %v27_v16  ;;  %410 = vmatprep.subr.bf16.mxu1 %v409_v15 }
   0xd   :  { %420 = vmatpush3.bf16.msra.mxu0 %v417_v22 }
   0xe   :  { %422 = vmatprep.subr.bf16.mxu0 %v421_v32 }
   0xf   :  { %412 = vmatpush3.bf16.msra.mxu1 %v409_v15 }
  0x10   :  { %414 = vmatprep.subr.bf16.mxu1 %v413_v19 }
  0x11   :  { %424 = vmatpush3.bf16.msra.mxu0 %v421_v32 }
  0x13   :  { %416 = vmatpush3.bf16.msra.mxu1 %v413_v19 }
  0xdf   :  { %v362_v24 = vpop.f32.mrb[0].mxu0 }
  0xe0   :  { %v118_v25 = vadd.f32 %v362_v24, %v321_v23  ;;  %v112_v26 = vpop.f32.mrb[1].mxu0 }
  0xe1   :  { %v113_v27 = vadd.f32 %v321_v23, %v112_v26 }
  0xe2   :  { %v122_v29 = vmax.f32 %v118_v25, 0.0 }
  0xe3   :  { %v121_v28 = vmax.f32 %v113_v27, 0.0 }
  0xe5   :  { %379 = vmatprep.mubr.msk.f32.mxu1 %vm138_vm1, %v121_v28 }
  0xe6   :  { %380 = vmatmul.mubr.msk.f32.vlgmr.msra.gmra.mrb[0].mxu1 %vm138_vm1, %v122_v29 }
 0x1b9   :  { %v381_v34 = vpop.f32.mrb[0].mxu1 }
 0x1ba   :  { %v217_v35 = vadd.f32 %v381_v34, %v324_v33  ;;  %v211_v36 = vpop.f32.mrb[1].mxu1 }
 0x1bb   :  { %v212_v37 = vadd.f32 %v324_v33, %v211_v36 }
 0x1bc   :  { %v221_v39 = vmax.f32 %v217_v35, 0.0 }
 0x1bd   :  { %v220_v38 = vmax.f32 %v212_v37, 0.0 }
 0x1bf   :  { %390 = vmatprep.mubr.msk.f32.mxu0 %vm39_vm0, %v220_v38 }
 0x1c0   :  { %391 = vmatmul.mubr.msk.f32.vlgmr.msra.gmra.mrb[2].mxu0 %vm39_vm0, %v221_v39 }
 0x293   :  { %v392_v41 = vpop.f32.mrb[2].mxu0 }
 0x294   :  { %v311_v42 = vadd.f32 %v392_v41, %v327_v40  ;;  %v305_v43 = vpop.f32.mrb[3].mxu0 }
 0x295   :  { %v306_v44 = vadd.f32 %v327_v40, %v305_v43 }
 0x296   :  { %316 = vst.msk [vmem:[%s545_s7 + $0x8] sm:$0xff] %vm314_vm2, %v311_v42 }
 0x297   :  { %315 = vst.msk [vmem:[%s545_s7] sm:$0xff] %vm314_vm2, %v306_v44 }

</bundles_post_ra>
